<compile_context>
chip_gen: v7x
topology: tpu7x:2x2x1
jax: 0.10.0
libtpu: 0.0.40
codegen_flags: <defaults>
</compile_context>

<pallas_src>
import jax
import jax.numpy as jnp
from jax.experimental import pallas as pl
from jax.experimental.pallas import tpu as pltpu

_LANE = 128
_VMEM_LIMIT_BYTES = 32 * 1024 * 1024   # safe on v5e/v6e (128 MiB) and v7x (64 MiB)


# ----------------------------- Pallas kernels ------------------------------ #

def _normalize_kernel(x_ref, o_ref):
    # F.normalize(x.float(), p=2, dim=-1): x / max(||x||_2, 1e-12)
    #   == x * rsqrt(max(||x||^2, 1e-24))        (rsqrt -> EUP slot)
    x = x_ref[...].astype(jnp.float32)
    sq = jnp.sum(x * x, axis=-1, keepdims=True)
    o_ref[...] = x * jax.lax.rsqrt(jnp.maximum(sq, jnp.float32(1e-24)))


def _softmax_kernel(x_ref, o_ref):
    # F.softmax(x.float(), dim=-1); exact divide (denominator >= 1).
    x = x_ref[...].astype(jnp.float32)
    m = jnp.max(x, axis=-1, keepdims=True)
    e = jnp.exp(x - m)
    o_ref[...] = e / jnp.sum(e, axis=-1, keepdims=True)


def _group_reduce(v, d, reduce_fn):
    """Exact reduction over contiguous d-wide lane groups of v:[rows, W],
    broadcast back so every lane holds its group's reduction.  Uses only
    static lane slices + concat (no in-kernel reshape, no MXU), so it lowers
    cleanly and matches fp32 math up to summation order."""
    rows, w = v.shape
    parts = []
    for g in range(w // d):
        r = reduce_fn(v[:, g * d:(g + 1) * d])            # (rows, 1)
        parts.append(jnp.broadcast_to(r, (rows, d)))
    return jnp.concatenate(parts, axis=-1)                # (rows, W)


def _make_packed_normalize_kernel(d):
    """Normalize kernel for lane-packed input: each 128-lane row holds
    128 // d independent pooled rows of width d."""
    def kernel(x_ref, o_ref):
        x = x_ref[...].astype(jnp.float32)
        sq = _group_reduce(x * x, d,
                           lambda t: jnp.sum(t, axis=-1, keepdims=True))
        o_ref[...] = x * jax.lax.rsqrt(jnp.maximum(sq, jnp.float32(1e-24)))
    return kernel


def _make_packed_softmax_kernel(d):
    """Softmax kernel for lane-packed input (exact per-group max and sum)."""
    def kernel(x_ref, o_ref):
        x = x_ref[...].astype(jnp.float32)
        m = _group_reduce(x, d, lambda t: jnp.max(t, axis=-1, keepdims=True))
        e = jnp.exp(x - m)
        s = _group_reduce(e, d, lambda t: jnp.sum(t, axis=-1, keepdims=True))
        o_ref[...] = e / s
    return kernel


# ----------------------------- tiling helpers ------------------------------ #

def _sublane_pack(itemsize: int) -> int:
    # sublane packing of the input dtype: 8 (f32), 16 (bf16), 32 (int8/fp8)
    return max(8, 32 // max(int(itemsize), 1))


def _chip_profile():
    """(vmem_budget_bytes, num_tensorcores), conservative per generation."""
    kind = ""
    try:
        kind = jax.devices()[0].device_kind.lower()
    except Exception:
        pass
    k = kind.replace(" ", "")
    if "v7" in k:
        budget, cores = 20 << 20, 2      # 64 MiB physical VMEM/TC, 2 TCs
    elif "v6" in k:
        budget, cores = 24 << 20, 1      # 128 MiB physical: take bigger tiles
    elif "v5lite" in k or "v5e" in k:
        budget, cores = 10 << 20, 1      # 16 MiB scoped-VMEM default on v5e
    else:
        budget, cores = 14 << 20, 1      # unknown / v4 / v5p: stay conservative
    try:  # cap against the real VMEM size when the query is available
        phys = int(pltpu.get_tpu_info().vmem_capacity_bytes)
        budget = min(budget, max(phys // 3, 8 << 20))
    except Exception:
        pass
    return budget, cores


def _choose_block_rows(n_rows: int, width: int, in_itemsize: int) -> int:
    budget, n_cores = _chip_profile()
    pack = _sublane_pack(in_itemsize)
    # per-row bytes: double-buffered input tile + double-buffered fp32 output
    # tile + ~2 full-tile fp32 temporaries (x.astype(f32), exp(x-m), ...)
    bytes_per_row = width * (2 * in_itemsize + 2 * 4 + 2 * 4)
    rows = max(budget // max(bytes_per_row, 1), pack)
    rows -= rows % pack
    if rows < n_rows:
        return rows
    # One step covers everything.  Split only on multi-TensorCore chips (v7x)
    # and only with >= ~1 MiB of output per core; on single-TC chips the grid
    # is a serial loop and splitting just adds another ~0.35 us step.
    out_bytes = n_rows * width * 4
    if n_cores >= 2 and out_bytes >= (2 << 20):
        return max(pl.cdiv(pl.cdiv(n_rows, 2), pack) * pack, pack)
    return n_rows


def _launch(kernel, x, width):
    """Run `kernel` over row blocks of x[:, :width]; returns float32 [N, width].

    `width` is either x.shape[-1] or a multiple of 128 (fused matryoshka
    truncation), so the block stays (8,128)-legal.  x keeps its original dtype
    (e.g. bf16); the kernel upcasts on load -> no wrapper-side fp32 pre-cast.
    """
    n = x.shape[0]
    block_rows = _choose_block_rows(n, width, jnp.dtype(x.dtype).itemsize)
    return pl.pallas_call(
        kernel,
        out_shape=jax.ShapeDtypeStruct((n, width), jnp.float32),
        grid=(pl.cdiv(n, block_rows),),
        in_specs=[pl.BlockSpec((block_rows, width), lambda i: (i, 0))],
        out_specs=pl.BlockSpec((block_rows, width), lambda i: (i, 0)),
        compiler_params=pltpu.CompilerParams(
            dimension_semantics=("parallel",),
            vmem_limit_bytes=_VMEM_LIMIT_BYTES),
    )(x)


def _activate_2d(activation, x, trunc_d):
    """x: [N, D] (any float dtype); returns float32 [N, d_eff]."""
    n, d_full = x.shape
    d = d_full if trunc_d is None else min(int(trunc_d), d_full)

    if activation == "identity":
        y = x if d == d_full else x[..., :d]
        return y.astype(jnp.float32)

    if activation == "softmax" and d < 2:
        # PoolerClassify with num_labels < 2 -> sigmoid.  A D==1 launch would
        # be pure overhead at 1/128 lane utilization -> plain JAX.
        y = x if d == d_full else x[..., :d]
        return jax.nn.sigmoid(y.astype(jnp.float32))

    if n == 0 or d == 0:
        return jnp.zeros((n, d), jnp.float32)

    norm = activation == "normalize"

    # (a) lane-packed path: small D dividing 128 -> bit-cast [N, d] to
    #     [N/g, 128] so DMA / vld / vst are full-lane dense.
    if d < _LANE and _LANE % d == 0 and d >= 8:
        xs = x if d == d_full else x[..., :d]
        # TODO(synk): fuse this sub-128 matryoshka slice into the kernel too
        # (mask columns >= d); today it costs one tiny extra HBM pass.
        g = _LANE // d
        if n % g == 0:
            packed = xs.reshape(n // g, _LANE)          # free row-major bitcast
            kern = (_make_packed_normalize_kernel(d) if norm
                    else _make_packed_softmax_kernel(d))
            return _launch(kern, packed, _LANE).reshape(n, d)
        kern = _normalize_kernel if norm else _softmax_kernel
        return _launch(kern, xs, d)

    # (b) wide / irregular path.  If the (truncated) width is a multiple of
    #     128, the truncation is fused into the input BlockSpec (the kernel
    #     only ever reads columns [0, d)); otherwise slice in the wrapper.
    kern = _normalize_kernel if norm else _softmax_kernel
    if d == d_full or d % _LANE == 0:
        return _launch(kern, x, d)
    return _launch(kern, x[..., :d], d)


# ------------------------------ PoolerHead --------------------------------- #

class PoolerHead:
    """JAX/Pallas port of vllm PoolerHead.

    activation: "normalize" | "softmax" | "identity"
      (PoolerHead.from_config: normalize -> PoolerNormalize,
       softmax -> PoolerClassify, else -> PoolerIdentity).
    """

    def __init__(self, activation: str):
        assert activation in ("normalize", "softmax", "identity")
        self.activation = activation

    def _apply(self, x, trunc_d):
        lead = x.shape[:-1]
        x2 = x if x.ndim == 2 else x.reshape(-1, x.shape[-1])
        out = _activate_2d(self.activation, x2, trunc_d)
        return out if x.ndim == 2 else out.reshape(lead + (out.shape[-1],))

    def __call__(self, pooled_data, dimensions_list=None):
        """pooled_data: [N, D] array or list of [D] / [N_i, D] arrays.
        dimensions_list: per-request matryoshka dims (or None)."""
        is_list = isinstance(pooled_data, list)
        if dimensions_list is None:
            dimensions_list = [None] * (len(pooled_data) if is_list else 1)

        if not is_list:
            # The module only truncates the tensor path when every request
            # asks for the same dimensionality.
            trunc_d = None
            if any(d is not None for d in dimensions_list):
                assert len(set(dimensions_list)) == 1, \
                    "tensor path needs uniform dimensions"
                trunc_d = dimensions_list[0]
            return self._apply(pooled_data, trunc_d)

        # ---- list path: batch same-width requests into one launch ----------
        views = []
        for v, dim in zip(pooled_data, dimensions_list):
            v2 = v if v.ndim == 2 else v.reshape(-1, v.shape[-1])
            w = v2.shape[-1] if dim is None else min(int(dim), v2.shape[-1])
            views.append((v, v2, w))

        results = [None] * len(views)

        if self.activation == "identity":
            for i, (v, v2, w) in enumerate(views):
                y = (v2 if w == v2.shape[-1] else v2[..., :w]).astype(jnp.float32)
                results[i] = y if v.ndim == 2 else y.reshape(v.shape[:-1] + (w,))
            return results

        groups = {}
        for i, (_, _, w) in enumerate(views):
            groups.setdefault(w, []).append(i)

        for w, idxs in groups.items():
            chunks = [views[i][1][..., :w] for i in idxs]
            batched = chunks[0] if len(chunks) == 1 else jnp.concatenate(chunks, axis=0)
            out = _activate_2d(self.activation, batched, None)
            off = 0
            for i, c in zip(idxs, chunks):
                r = out[off:off + c.shape[0]]
                off += c.shape[0]
                v = views[i][0]
                results[i] = r if v.ndim == 2 else r.reshape(v.shape[:-1] + (w,))
        return results


# --------------------------------- main ------------------------------------ #

if __name__ == "__main__":
    key = jax.random.PRNGKey(0)
    k1, k2, k3, k4 = jax.random.split(key, 4)

    # --- normalize head (embedding models) ---------------------------------
    head_norm = PoolerHead("normalize")

    # (a) small hidden dim + matryoshka truncation -> lane-packed kernel
    N, D = 8, 32
    pooled = jax.random.normal(k1, (N, D), dtype=jnp.bfloat16)
    out = jax.block_until_ready(head_norm(pooled, dimensions_list=[16]))
    ref_in = pooled.astype(jnp.float32)[..., :16]
    ref16 = ref_in / jnp.maximum(jnp.linalg.norm(ref_in, axis=-1, keepdims=True), 1e-12)
    assert out.shape == (N, 16) and out.dtype == jnp.float32
    assert jnp.allclose(out, ref16, atol=2e-3, rtol=2e-3)

    # (b) no truncation, D=32 -> lane-packed (4 pooled rows per 128-lane row)
    out_full = jax.block_until_ready(head_norm(pooled))
    ref_in = pooled.astype(jnp.float32)
    ref_full = ref_in / jnp.maximum(jnp.linalg.norm(ref_in, axis=-1, keepdims=True), 1e-12)
    assert jnp.allclose(out_full, ref_full, atol=2e-3, rtol=2e-3)

    # (c) matryoshka dim that is a multiple of 128 -> truncation fused into
    #     the input BlockSpec (no wrapper-side slice / extra HBM pass)
    big = jax.random.normal(k2, (16, 256), dtype=jnp.bfloat16)
    out_big = jax.block_until_ready(head_norm(big, dimensions_list=[128]))
    ref_in = big.astype(jnp.float32)[..., :128]
    ref_big = ref_in / jnp.maximum(jnp.linalg.norm(ref_in, axis=-1, keepdims=True), 1e-12)
    assert out_big.shape == (16, 128)
    assert jnp.allclose(out_big, ref_big, atol=2e-3, rtol=2e-3)

    # --- classification head (softmax / sigmoid) ----------------------------
    head_cls = PoolerHead("softmax")

    logits = jax.random.normal(k3, (8, 32), dtype=jnp.float32)
    out_cls = jax.block_until_ready(head_cls(logits))
    assert jnp.allclose(out_cls, jax.nn.softmax(logits, axis=-1), atol=1e-3, rtol=1e-3)

    odd = jax.random.normal(k3, (8, 10), dtype=jnp.float32)   # D doesn't divide 128
    out_odd = jax.block_until_ready(head_cls(odd))
    assert jnp.allclose(out_odd, jax.nn.softmax(odd, axis=-1), atol=1e-3, rtol=1e-3)

    single = jax.random.normal(k4, (8, 1), dtype=jnp.float32)  # num_labels < 2
    out_sig = jax.block_until_ready(head_cls(single))
    assert jnp.allclose(out_sig, jax.nn.sigmoid(single), atol=1e-6)

    # --- identity head -------------------------------------------------------
    head_id = PoolerHead("identity")
    out_id = jax.block_until_ready(head_id(pooled))
    assert out_id.dtype == jnp.float32
    assert jnp.allclose(out_id, pooled.astype(jnp.float32))

    # --- list path with per-request matryoshka dims (batched launches) ------
    lst = [pooled[0], pooled[1:3], pooled[3:5]]
    out_lst = head_norm(lst, dimensions_list=[16, None, None])
    jax.block_until_ready(out_lst)
    assert out_lst[0].shape == (16,) and out_lst[1].shape == (2, D)
    assert jnp.allclose(out_lst[0], ref16[0], atol=2e-3, rtol=2e-3)
    assert jnp.allclose(out_lst[1], ref_full[1:3], atol=2e-3, rtol=2e-3)
    assert jnp.allclose(out_lst[2], ref_full[3:5], atol=2e-3, rtol=2e-3)

    print("KERNEL_OK")
</pallas_src>

<mosaic_0001>
module attributes {stable_mosaic.version = 11 : i64} {
  func.func @kernel(%arg0: i32, %arg1: memref<1x128xbf16, #tpu.memory_space<vmem>>, %arg2: memref<1x128xf32, #tpu.memory_space<vmem>>) attributes {dimension_semantics = [#tpu.dimension_semantics<parallel>], iteration_bounds = array<i64: 1>, scalar_prefetch = 0 : i64, scratch_operands = 0 : i64, tpu.core_type = #tpu.core_type<tc>, window_params = [{transform_indices = @transform_0, window_bounds = array<i64: 1, 128>}, {transform_indices = @transform_1, window_bounds = array<i64: 1, 128>}]} {
    %c0 = arith.constant 0 : index
    %c0_0 = arith.constant 0 : index
    %0 = vector.load %arg1[%c0, %c0_0] : memref<1x128xbf16, #tpu.memory_space<vmem>>, vector<1x128xbf16>
    %1 = arith.extf %0 : vector<1x128xbf16> to vector<1x128xf32>
    %2 = arith.mulf %1, %1 : vector<1x128xf32>
    %3 = vector.extract_strided_slice %2 {offsets = [0, 0], sizes = [1, 16], strides = [1, 1]} : vector<1x128xf32> to vector<1x16xf32>
    %cst = arith.constant dense<0.000000e+00> : vector<1xf32>
    %4 = vector.multi_reduction <add>, %3, %cst [1] : vector<1x16xf32> to vector<1xf32>
    %5 = vector.shape_cast %4 : vector<1xf32> to vector<1x1xf32>
    %6 = vector.shape_cast %5 : vector<1x1xf32> to vector<1x1xf32>
    %7 = vector.broadcast %6 : vector<1x1xf32> to vector<1x16xf32>
    %8 = vector.extract_strided_slice %2 {offsets = [0, 16], sizes = [1, 16], strides = [1, 1]} : vector<1x128xf32> to vector<1x16xf32>
    %cst_1 = arith.constant dense<0.000000e+00> : vector<1xf32>
    %9 = vector.multi_reduction <add>, %8, %cst_1 [1] : vector<1x16xf32> to vector<1xf32>
    %10 = vector.shape_cast %9 : vector<1xf32> to vector<1x1xf32>
    %11 = vector.shape_cast %10 : vector<1x1xf32> to vector<1x1xf32>
    %12 = vector.broadcast %11 : vector<1x1xf32> to vector<1x16xf32>
    %13 = vector.extract_strided_slice %2 {offsets = [0, 32], sizes = [1, 16], strides = [1, 1]} : vector<1x128xf32> to vector<1x16xf32>
    %cst_2 = arith.constant dense<0.000000e+00> : vector<1xf32>
    %14 = vector.multi_reduction <add>, %13, %cst_2 [1] : vector<1x16xf32> to vector<1xf32>
    %15 = vector.shape_cast %14 : vector<1xf32> to vector<1x1xf32>
    %16 = vector.shape_cast %15 : vector<1x1xf32> to vector<1x1xf32>
    %17 = vector.broadcast %16 : vector<1x1xf32> to vector<1x16xf32>
    %18 = vector.extract_strided_slice %2 {offsets = [0, 48], sizes = [1, 16], strides = [1, 1]} : vector<1x128xf32> to vector<1x16xf32>
    %cst_3 = arith.constant dense<0.000000e+00> : vector<1xf32>
    %19 = vector.multi_reduction <add>, %18, %cst_3 [1] : vector<1x16xf32> to vector<1xf32>
    %20 = vector.shape_cast %19 : vector<1xf32> to vector<1x1xf32>
    %21 = vector.shape_cast %20 : vector<1x1xf32> to vector<1x1xf32>
    %22 = vector.broadcast %21 : vector<1x1xf32> to vector<1x16xf32>
    %23 = vector.extract_strided_slice %2 {offsets = [0, 64], sizes = [1, 16], strides = [1, 1]} : vector<1x128xf32> to vector<1x16xf32>
    %cst_4 = arith.constant dense<0.000000e+00> : vector<1xf32>
    %24 = vector.multi_reduction <add>, %23, %cst_4 [1] : vector<1x16xf32> to vector<1xf32>
    %25 = vector.shape_cast %24 : vector<1xf32> to vector<1x1xf32>
    %26 = vector.shape_cast %25 : vector<1x1xf32> to vector<1x1xf32>
    %27 = vector.broadcast %26 : vector<1x1xf32> to vector<1x16xf32>
    %28 = vector.extract_strided_slice %2 {offsets = [0, 80], sizes = [1, 16], strides = [1, 1]} : vector<1x128xf32> to vector<1x16xf32>
    %cst_5 = arith.constant dense<0.000000e+00> : vector<1xf32>
    %29 = vector.multi_reduction <add>, %28, %cst_5 [1] : vector<1x16xf32> to vector<1xf32>
    %30 = vector.shape_cast %29 : vector<1xf32> to vector<1x1xf32>
    %31 = vector.shape_cast %30 : vector<1x1xf32> to vector<1x1xf32>
    %32 = vector.broadcast %31 : vector<1x1xf32> to vector<1x16xf32>
    %33 = vector.extract_strided_slice %2 {offsets = [0, 96], sizes = [1, 16], strides = [1, 1]} : vector<1x128xf32> to vector<1x16xf32>
    %cst_6 = arith.constant dense<0.000000e+00> : vector<1xf32>
    %34 = vector.multi_reduction <add>, %33, %cst_6 [1] : vector<1x16xf32> to vector<1xf32>
    %35 = vector.shape_cast %34 : vector<1xf32> to vector<1x1xf32>
    %36 = vector.shape_cast %35 : vector<1x1xf32> to vector<1x1xf32>
    %37 = vector.broadcast %36 : vector<1x1xf32> to vector<1x16xf32>
    %38 = vector.extract_strided_slice %2 {offsets = [0, 112], sizes = [1, 16], strides = [1, 1]} : vector<1x128xf32> to vector<1x16xf32>
    %cst_7 = arith.constant dense<0.000000e+00> : vector<1xf32>
    %39 = vector.multi_reduction <add>, %38, %cst_7 [1] : vector<1x16xf32> to vector<1xf32>
    %40 = vector.shape_cast %39 : vector<1xf32> to vector<1x1xf32>
    %41 = vector.shape_cast %40 : vector<1x1xf32> to vector<1x1xf32>
    %42 = vector.broadcast %41 : vector<1x1xf32> to vector<1x16xf32>
    %43 = tpu.concatenate %7, %12, %17, %22, %27, %32, %37, %42 in 1 : vector<1x16xf32>, vector<1x16xf32>, vector<1x16xf32>, vector<1x16xf32>, vector<1x16xf32>, vector<1x16xf32>, vector<1x16xf32>, vector<1x16xf32> -> vector<1x128xf32>
    %cst_8 = arith.constant 1.000000e-24 : f32
    %44 = vector.broadcast %cst_8 : f32 to vector<1x128xf32>
    %45 = arith.maximumf %43, %44 : vector<1x128xf32>
    %46 = math.rsqrt %45 : vector<1x128xf32>
    %47 = arith.mulf %1, %46 : vector<1x128xf32>
    %c0_9 = arith.constant 0 : index
    %c0_10 = arith.constant 0 : index
    %48 = vector.load %arg2[%c0_9, %c0_10] : memref<1x128xf32, #tpu.memory_space<vmem>>, vector<1x128xf32>
    tpu.vector_store %arg2[%c0_9, %c0_10], %47 {strides = array<i32>} : memref<1x128xf32, #tpu.memory_space<vmem>>, vector<1x128xf32>,
    return
  }
  func.func @transform_0(%arg0: i32) -> (i32, i32) {
    %c0_i32 = arith.constant 0 : i32
    %c0_i32_0 = arith.constant 0 : i32
    return %arg0, %c0_i32 : i32, i32
  }
  func.func @transform_1(%arg0: i32) -> (i32, i32) {
    %c0_i32 = arith.constant 0 : i32
    %c0_i32_0 = arith.constant 0 : i32
    return %arg0, %c0_i32 : i32, i32
  }
}

</mosaic_0001>

<bundles_post_ra>
// kernel: tpu_custom_call.1
= control target key start
LH: loop header
LB: loop body
LE: loop exit
PB: predicated region body
PF: predicated region fallthrough
CT: control target
= control target key end

     0   :  { %6 = vsyncpa [#allocation3], 0  ;;  %s223_s0 = inlined_call_operand.hbm [shape: bf16[1,128], index: 0, kind: input, shape index: {}]   ;;  %s224_s1 = inlined_call_operand.hbm [shape: f32[1,128], index: 1, kind: output, shape index: {}]  }
   0x1   :  { %7 = vsyncpa [#allocation4], 0  ;;  %s167_s6 = smov [#allocation2]   ;;  %s119_s10 = scalar_lea.hbm %s223_s0, 16 }
   0x2   :  { %s14_s7 = sshll.u32 %s167_s6, 4  ;;  %p120_p0 = scmp.ne.s32.totalorder %s223_s0, %s119_s10  ;;  %s15_s7 = int_to_ptr.vmem [resolvable:$true] %s14_s7 }
   0x3   :  { %p123_p1 = scmp.lt.u32.totalorder %s119_s10, %s223_s0 }
   0x5   :  { %p125_p2 = pnand %p123_p1, %p120_p0 }
   0x7   :  { %128 = shalt.err (!%p125_p2)
}
   0x8   :  { %s129_s15 = scalar_lea.vmem %s15_s7, 16  ;;  %s133_s16 = scalar_lea.vmem %s15_s7, 32 }
   0x9   :  { %p130_p3 = scmp.ne.s32.totalorder %s15_s7, %s129_s15  ;;  %p134_p4 = scmp.lt.s32.totalorder %s15_s7, %s15_s7 }
   0xa   :  { %p135_p5 = scmp.lt.s32.totalorder %s133_s16, %s129_s15 }
   0xc   :  { %p136_p6 = por %p135_p5, %p134_p4 }
   0xe   :  { %p137_p7 = pnand %p136_p6, %p130_p3 }
  0x10   :  { %140 = shalt.err (!%p137_p7)
}
  0x11   :  { %17 = dma.hbm_to_vmem [thread:$0]  %s223_s0, 16, %s15_s7, [#allocation3]  }
  0x12   :  { %163 = dma.done.wait [#allocation3], 16  }
  0x13   :  { %164 = vsyncadd [#allocation3], 4294967280  ;;  %v29_v0 = vlaneseq  ;;  %v21_v2 = vld [vmem:[#allocation2] sm:$0x1]  ;;  %vm24_vm0 = vcmask 122880   ;;  %s168_s19 = smov 96  }
  0x14   :  { %v198_v3 = vunpack.c.l.bf16 %v21_v2  ;;  %s169_s20 = smov 80   ;;  %s170_s0 = smov 64   ;;  %vm75_vm1 = vcmask 130048   ;;  %vm77_vm2 = vcmask 261120   ;;  %vm79_vm3 = vcmask 392192  }
  0x15   :  { %v30_v1 = vshrl.u32 %v29_v0, 7  ;;  %s171_s21 = smov 32   ;;  %s172_s22 = smov 112   ;;  %vm81_vm4 = vcmask 523264   ;;  %vm83_vm5 = vcmask 654336   ;;  %vm85_vm6 = vcmask 785408  }
  0x16   :  { %v23_v5 = vmul.f32 %v198_v3, %v198_v3  ;;  %s173_s23 = smov 48   ;;  %s174_s24 = smov 16   ;;  %vm87_vm7 = vcmask 916480  }
  0x17   :  { %v31_v4 = vsub.s32 0, %v30_v1  ;;  %s175_s25 = smov [#allocation5]  }
  0x18   :  { %v25_v6 = vsel %vm24_vm0, %v23_v5, 0.0  ;;  %s99_s26 = sshll.u32 %s175_s25, 4  ;;  %s100_s26 = int_to_ptr.vmem [resolvable:$true] %s99_s26 }
  0x19   :  { %v32_v7 = vrot.slane %v23_v5, %v31_v4  ;;  %26 = vadd.xlane.f32.xlu0 %v25_v6  ;;  %s141_s27 = scalar_lea.vmem %s100_s26, 16  ;;  %s145_s28 = scalar_lea.vmem %s100_s26, 32 }
  0x1a   :  { %p142_p8 = scmp.ne.s32.totalorder %s100_s26, %s141_s27  ;;  %p146_p9 = scmp.lt.s32.totalorder %s100_s26, %s100_s26 }
  0x1b   :  { %39 = vrot.lane.b32.xlu1 %v32_v7, %s168_s19  ;;  %p147_p10 = scmp.lt.s32.totalorder %s145_s28, %s141_s27 }
  0x1d   :  { %p148_p11 = por %p147_p10, %p146_p9 }
  0x1f   :  { %45 = vrot.lane.b32.xlu1 %v32_v7, %s169_s20  ;;  %p149_p12 = pnand %p148_p11, %p142_p8 }
  0x23   :  { %51 = vrot.lane.b32.xlu1 %v32_v7, %s170_s0 }
  0x27   :  { %63 = vrot.lane.b32.xlu1 %v32_v7, %s171_s21 }
  0x2f   :  { %33 = vrot.lane.b32.xlu0 %v32_v7, %s172_s22 }
  0x33   :  { %57 = vrot.lane.b32.xlu0 %v32_v7, %s173_s23 }
  0x37   :  { %69 = vrot.lane.b32.xlu0 %v32_v7, %s174_s24 }
  0x8d   :  { %v40_v8 = vpop.permute.xlu1 %39 }
  0x8e   :  { %v42_v18 = vsel %vm24_vm0, %v40_v8, 0.0 }
  0x91   :  { %v46_v9 = vpop.permute.xlu1 %45 }
  0x92   :  { %v48_v10 = vsel %vm24_vm0, %v46_v9, 0.0 }
  0x93   :  { %49 = vadd.xlane.f32.xlu0 %v48_v10 }
  0x95   :  { %v52_v11 = vpop.permute.xlu1 %51 }
  0x96   :  { %v54_v12 = vsel %vm24_vm0, %v52_v11, 0.0 }
  0x97   :  { %55 = vadd.xlane.f32.xlu0 %v54_v12 }
  0x99   :  { %v64_v17 = vpop.permute.xlu1 %63 }
  0x9a   :  { %v66_v20 = vsel %vm24_vm0, %v64_v17, 0.0 }
  0xa6   :  { %v27_v13 = vpop.xlane.xlu0 %26 }
  0xaa   :  { %v34_v14 = vpop.permute.xlu0 %33 }
  0xab   :  { %v36_v15 = vsel %vm24_vm0, %v34_v14, 0.0 }
  0xac   :  { %37 = vadd.xlane.f32.xlu1 %v36_v15 }
  0xae   :  { %v58_v16 = vpop.permute.xlu0 %57 }
  0xaf   :  { %v60_v19 = vsel %vm24_vm0, %v58_v16, 0.0 }
  0xb0   :  { %43 = vadd.xlane.f32.xlu1 %v42_v18  ;;  %61 = vadd.xlane.f32.xlu0 %v60_v19 }
  0xb2   :  { %v70_v21 = vpop.permute.xlu0 %69 }
  0xb3   :  { %v72_v22 = vsel %vm24_vm0, %v70_v21, 0.0 }
  0xb4   :  { %67 = vadd.xlane.f32.xlu1 %v66_v20  ;;  %73 = vadd.xlane.f32.xlu0 %v72_v22 }
 0x120   :  { %v50_v23 = vpop.xlane.xlu0 %49 }
 0x124   :  { %v56_v24 = vpop.xlane.xlu0 %55 }
 0x139   :  { %v38_v25 = vpop.xlane.xlu1 %37 }
 0x13a   :  { %v76_v26 = vsel %vm75_vm1, %v27_v13, %v38_v25 }
 0x13d   :  { %v44_v27 = vpop.xlane.xlu1 %43  ;;  %v62_v28 = vpop.xlane.xlu0 %61 }
 0x13e   :  { %v78_v29 = vsel %vm77_vm2, %v76_v26, %v44_v27 }
 0x13f   :  { %v80_v30 = vsel %vm79_vm3, %v78_v29, %v50_v23 }
 0x140   :  { %v82_v31 = vsel %vm81_vm4, %v80_v30, %v56_v24 }
 0x141   :  { %v84_v32 = vsel %vm83_vm5, %v82_v31, %v62_v28  ;;  %v68_v33 = vpop.xlane.xlu1 %67  ;;  %v74_v34 = vpop.xlane.xlu0 %73 }
 0x142   :  { %v86_v35 = vsel %vm85_vm6, %v84_v32, %v68_v33 }
 0x143   :  { %v88_v36 = vsel %vm87_vm7, %v86_v35, %v74_v34 }
 0x144   :  { %v89_v37 = vmax.f32 %v88_v36, 1e-24 }
 0x146   :  { %117 = vrsqrt.f32 %v89_v37 }
 0x150   :  { %v118_v38 = vpop.eup %117 }
 0x151   :  { %v91_v39 = vmul.f32 %v118_v38, %v198_v3 }
 0x153   :  { %92 = vst [vmem:[#allocation5] sm:$0x1] %v91_v39 }
 0x154   :  { %152 = shalt.err (!%p149_p12)
}
 0x155   :  { %s153_s2 = scalar_lea.hbm %s224_s1, 16 }
 0x156   :  { %p154_p13 = scmp.ne.s32.totalorder %s224_s1, %s153_s2  ;;  %p157_p0 = scmp.lt.u32.totalorder %s153_s2, %s224_s1 }
 0x158   :  { %p159_p1 = pnand %p157_p0, %p154_p13 }
 0x15a   :  { %162 = shalt.err (!%p159_p1)
}
 0x15b   :  { %102 = dma.vmem_to_hbm [thread:$0]  %s100_s26, 16, %s224_s1, [#allocation4]  }
 0x15c   :  { %165 = dma.done.wait [#allocation4], 16  }
 0x15d   :  { %166 = vsyncadd [#allocation4], 4294967280 }
 0x15e   :  { %106 = vsyncpa [#allocation3], 1 }
 0x15f   :  { %107 = vsyncpa [#allocation4], 1 }

</bundles_post_ra>
